<compile_context>
chip_gen: v5e
topology: v5e:2x2
jax: 0.10.0
libtpu: 0.0.40
codegen_flags: <defaults>
</compile_context>

<pallas_src>
import functools
import math

import jax
import jax.numpy as jnp
from jax import lax
from jax.experimental import pallas as pl
from jax.experimental.pallas import tpu as pltpu

_VMEM_LIMIT_BYTES = 32 * 1024 * 1024       # safe on v5e/v6e/v7x
_ATTN_VMEM_BUDGET = 24 * 1024 * 1024       # leave headroom under the limit


def _pick_tile(dim, preferred, aligns):
    """Largest tile <= preferred that is a multiple of one of `aligns` (tried in
    order) and divides `dim`.  Falls back to the full dimension (always legal)."""
    if dim <= preferred:
        return dim
    for a in aligns:
        t = (preferred // a) * a
        while t >= a:
            if dim % t == 0:
                return t
            t -= a
    return dim


# ---------------------------------------------------------------------------
# Kernel 1: tiled dense linear layer  y = x @ W^T + b
# x: (M, IN) bf16, w: (OUT, IN) bf16 (PyTorch nn.Linear convention), b: (1, OUT) f32
# ---------------------------------------------------------------------------
def _linear_kernel(x_ref, w_ref, b_ref, o_ref, acc_ref):
    k = pl.program_id(2)

    @pl.when(k == 0)
    def _init():
        acc_ref[...] = jnp.zeros_like(acc_ref)

    # x @ w^T without any in-kernel transpose: contract last dims of both operands.
    acc_ref[...] += lax.dot_general(
        x_ref[...], w_ref[...],
        dimension_numbers=(((1,), (1,)), ((), ())),
        preferred_element_type=jnp.float32)

    @pl.when(k == pl.num_programs(2) - 1)
    def _finalize():
        o_ref[...] = (acc_ref[...] + b_ref[...]).astype(o_ref.dtype)


def linear_pallas(x, w, b, *, out_dtype=jnp.float32):
    """x: (M, IN) any float dtype; w: (OUT, IN) bf16; b: (1, OUT) f32."""
    M, IN = x.shape
    OUT = w.shape[0]
    # Bigger tiles: amortize the ~0.35us/step pipeline overhead and clear the
    # HBM/MXU roofline crossover.  tn/tk prefer multiples of 256 (v6e/v7x MXU),
    # tm prefers multiples of 16 (bf16 sublane packing).
    tm = _pick_tile(M, 512, (16, 8))
    tn = _pick_tile(OUT, 512, (256, 128))
    tk = _pick_tile(IN, 1024, (256, 128))
    grid = (M // tm, OUT // tn, IN // tk)

    xc = x.astype(jnp.bfloat16)

    flops = 2 * M * OUT * IN
    bytes_accessed = int(xc.size * 2 + w.size * w.dtype.itemsize
                         + b.size * 4 + M * OUT * jnp.dtype(out_dtype).itemsize)

    return pl.pallas_call(
        _linear_kernel,
        grid=grid,
        in_specs=[
            pl.BlockSpec((tm, tk), lambda i, j, k: (i, k)),
            pl.BlockSpec((tn, tk), lambda i, j, k: (j, k)),
            pl.BlockSpec((1, tn), lambda i, j, k: (0, j)),
        ],
        out_specs=pl.BlockSpec((tm, tn), lambda i, j, k: (i, j)),
        out_shape=jax.ShapeDtypeStruct((M, OUT), out_dtype),
        scratch_shapes=[pltpu.VMEM((tm, tn), jnp.float32)],
        compiler_params=pltpu.CompilerParams(
            dimension_semantics=("parallel", "parallel", "arbitrary"),
            vmem_limit_bytes=_VMEM_LIMIT_BYTES),
        cost_estimate=pl.CostEstimate(
            flops=flops, transcendentals=0, bytes_accessed=bytes_accessed),
    )(xc, w, b)


# ---------------------------------------------------------------------------
# Kernel 2: multi-head scaled-dot-product attention, heads fused in-kernel.
# grid = (batch, query-tiles).  Each step sees one (tq, hid) Q slab (Q already
# pre-scaled by 1/sqrt(head_dim)), full (Sk, hid) K/V slabs (block index changes
# only with the batch axis, so they are re-DMA'd once per batch row), an optional
# raw mask block, and writes the merged (tq, hid) output lane-dense plus the
# (n_heads, tq, Sk) bf16 attention probabilities.
# ---------------------------------------------------------------------------
def _attn_kernel(*refs, n_heads, has_mask):
    if has_mask:
        q_ref, k_ref, v_ref, m_ref, o_ref, a_ref = refs
        masked_out = m_ref[0, 0] == 0            # (tq|1, Sk) — hoisted out of head loop
    else:
        q_ref, k_ref, v_ref, o_ref, a_ref = refs
        masked_out = None

    hid = q_ref.shape[-1]
    head_dim = hid // n_heads

    outs = []
    for h in range(n_heads):                     # static unrolled loop over heads
        lo = h * head_dim
        hi = lo + head_dim
        qh = q_ref[0, :, lo:hi]                  # (tq, Dh) bf16, pre-scaled
        kh = k_ref[0, :, lo:hi]                  # (Sk, Dh) bf16
        vh = v_ref[0, :, lo:hi]                  # (Sk, Dh) bf16

        # energy = qh @ kh^T — contract last dims of both operands, no transpose op.
        energy = lax.dot_general(
            qh, kh, dimension_numbers=(((1,), (1,)), ((), ())),
            preferred_element_type=jnp.float32)
        if has_mask:
            energy = jnp.where(masked_out, jnp.float32(-1e10), energy)

        # numerically-stable softmax over keys (f32 math)
        e_max = jnp.max(energy, axis=-1, keepdims=True)
        p = jnp.exp(energy - e_max)
        denom = jnp.sum(p, axis=-1, keepdims=True)
        attn = p * pl.reciprocal(denom, approx=False)   # exact: stored rows sum to 1

        a_ref[0, h] = attn.astype(a_ref.dtype)
        outs.append(jnp.dot(attn.astype(vh.dtype), vh,
                            preferred_element_type=jnp.float32))

    # merged, lane-dense output block (tq, hid)
    o_ref[0] = jnp.concatenate(outs, axis=-1).astype(o_ref.dtype)


def _attn_query_tile(Sq, Sk, hid, n_heads, attn_itemsize, mask_itemsize):
    """Pick tq so the per-step VMEM estimate stays under the budget."""
    def vmem_bytes(tq):
        q_blk = 2 * tq * hid * 2                     # Q, double-buffered bf16
        kv_blk = 2 * 2 * Sk * hid * 2                # K and V, double-buffered bf16
        o_blk = 2 * tq * hid * 2                     # merged output
        a_blk = 2 * n_heads * tq * Sk * attn_itemsize
        m_blk = 2 * tq * Sk * mask_itemsize
        tmp = 4 * tq * Sk * 4                        # live f32 energy/p temporaries
        return q_blk + kv_blk + o_blk + a_blk + m_blk + tmp

    tq = _pick_tile(Sq, 512, (16, 8))
    while tq > 16 and vmem_bytes(tq) > _ATTN_VMEM_BUDGET:
        nt = _pick_tile(Sq, max(16, tq // 2), (16, 8))
        if nt >= tq:
            break
        tq = nt
    return tq


def attention_pallas(q, k, v, mask, n_heads, *,
                     out_dtype=jnp.bfloat16, attn_dtype=jnp.bfloat16):
    """q: (B, Sq, hid), k/v: (B, Sk, hid) bf16 (Q pre-scaled by 1/sqrt(head_dim)),
    mask: None or (B|1, 1, Sq|1, Sk) numeric array (0 == masked out)."""
    B, Sq, hid = q.shape
    Sk = k.shape[1]
    head_dim = hid // n_heads
    has_mask = mask is not None
    mask_itemsize = mask.dtype.itemsize if has_mask else 0

    tq = _attn_query_tile(Sq, Sk, hid, n_heads,
                          jnp.dtype(attn_dtype).itemsize, mask_itemsize)
    grid = (B, Sq // tq)

    in_specs = [
        pl.BlockSpec((1, tq, hid), lambda b, qi: (b, qi, 0)),
        pl.BlockSpec((1, Sk, hid), lambda b, qi: (b, 0, 0)),
        pl.BlockSpec((1, Sk, hid), lambda b, qi: (b, 0, 0)),
    ]
    inputs = [q, k, v]
    if has_mask:
        mB, mH, mQ, mK = mask.shape
        assert mH == 1 and mK == Sk and mQ in (1, Sq) and mB in (1, B), \
            "mask must broadcast to (B, 1, Sq, Sk) with a size-1 head dim"
        tqm = tq if mQ == Sq else 1

        def mask_map(b, qi, _mB=mB, _mQ=mQ):
            return ((b if _mB > 1 else 0), 0, (qi if _mQ > 1 else 0), 0)

        in_specs.append(pl.BlockSpec((1, 1, tqm, Sk), mask_map))
        inputs.append(mask)

    kernel = functools.partial(_attn_kernel, n_heads=n_heads, has_mask=has_mask)

    flops = 4 * B * n_heads * Sq * Sk * head_dim
    bytes_accessed = int(sum(a.size * a.dtype.itemsize for a in inputs)
                         + B * Sq * hid * jnp.dtype(out_dtype).itemsize
                         + B * n_heads * Sq * Sk * jnp.dtype(attn_dtype).itemsize)

    return pl.pallas_call(
        kernel,
        grid=grid,
        in_specs=in_specs,
        out_specs=(
            pl.BlockSpec((1, tq, hid), lambda b, qi: (b, qi, 0)),          # merged x
            pl.BlockSpec((1, n_heads, tq, Sk), lambda b, qi: (b, 0, qi, 0)),
        ),
        out_shape=(
            jax.ShapeDtypeStruct((B, Sq, hid), out_dtype),
            jax.ShapeDtypeStruct((B, n_heads, Sq, Sk), attn_dtype),
        ),
        compiler_params=pltpu.CompilerParams(
            dimension_semantics=("parallel", "parallel"),
            vmem_limit_bytes=_VMEM_LIMIT_BYTES),
        cost_estimate=pl.CostEstimate(
            flops=flops, transcendentals=B * n_heads * Sq * Sk,
            bytes_accessed=bytes_accessed),
    )(*inputs)


# ---------------------------------------------------------------------------
# Parameter preparation (do once, reuse across forward calls):
#   * 1/sqrt(head_dim) folded into wq/bq,
#   * weights pre-cast to bf16, biases reshaped to (1, OUT) f32,
#   * fused QKV weight/bias pre-stacked for the self-attention fast path.
# ---------------------------------------------------------------------------
def prepare_params(params):
    n_heads = params["n_heads"]
    hid_dim = params["wq"].shape[0]
    head_dim = hid_dim // n_heads
    inv_scale = 1.0 / math.sqrt(float(head_dim))

    wq = params["wq"] * inv_scale
    bq = params["bq"] * inv_scale

    def w(x):
        return x.astype(jnp.bfloat16)

    def b(x):
        return x.reshape(1, -1).astype(jnp.float32)

    return {
        "n_heads": n_heads,
        "hid_dim": hid_dim,
        "wq": w(wq), "bq": b(bq),
        "wk": w(params["wk"]), "bk": b(params["bk"]),
        "wv": w(params["wv"]), "bv": b(params["bv"]),
        "wo": w(params["wo"]), "bo": b(params["bo"]),
        "w_qkv": w(jnp.concatenate([wq, params["wk"], params["wv"]], axis=0)),
        "b_qkv": b(jnp.concatenate([bq, params["bk"], params["bv"]], axis=0)),
    }


# ---------------------------------------------------------------------------
# Full module forward
# ---------------------------------------------------------------------------
def multi_head_attention_forward(prep, query, key, value, mask=None):
    """query/key/value: (B, S, hid_dim). Returns (x, attention) like the torch
    module; attention is returned in bf16."""
    B, Sq, hid_dim = query.shape
    Sk = key.shape[1]
    n_heads = prep["n_heads"]

    q2d = query.reshape(B * Sq, hid_dim)

    if (key is query) and (value is query):
        # Self-attention fast path: ONE fused QKV projection (stacked (3*hid, hid)
        # weight), so activations are read from HBM once.
        # NOTE: gated on Python object identity; under jit with three distinct
        # (but equal) tracers it falls back to three projections — same math.
        qkv = linear_pallas(q2d, prep["w_qkv"], prep["b_qkv"], out_dtype=jnp.bfloat16)
        Q, K, V = jnp.split(qkv, 3, axis=-1)
    else:
        k2d = key.reshape(B * Sk, hid_dim)
        v2d = value.reshape(B * Sk, hid_dim)
        Q = linear_pallas(q2d, prep["wq"], prep["bq"], out_dtype=jnp.bfloat16)
        K = linear_pallas(k2d, prep["wk"], prep["bk"], out_dtype=jnp.bfloat16)
        V = linear_pallas(v2d, prep["wv"], prep["bv"], out_dtype=jnp.bfloat16)

    # Free reshapes — the head split/merge happens inside the attention kernel.
    Q = Q.reshape(B, Sq, hid_dim)
    K = K.reshape(B, Sk, hid_dim)
    V = V.reshape(B, Sk, hid_dim)

    if mask is not None and mask.dtype == jnp.bool_:
        mask = mask.astype(jnp.int32)

    # NOTE: rows that are fully masked get a uniform 1/Sk attention row (same as
    # the reference softmax over all -1e10 energies), not zeros.
    xh, attention = attention_pallas(Q, K, V, mask, n_heads,
                                     out_dtype=jnp.bfloat16,
                                     attn_dtype=jnp.bfloat16)

    x = linear_pallas(xh.reshape(B * Sq, hid_dim), prep["wo"], prep["bo"],
                      out_dtype=jnp.float32)
    return x.reshape(B, Sq, hid_dim), attention


# ---------------------------------------------------------------------------
# Pure-JAX (f32) reference for verification
# ---------------------------------------------------------------------------
def _reference(params, query, key, value, mask=None):
    B, Sq, hid_dim = query.shape
    Sk = key.shape[1]
    n_heads = params["n_heads"]
    head_dim = hid_dim // n_heads
    scale = math.sqrt(float(head_dim))

    Q = query @ params["wq"].T + params["bq"]
    K = key @ params["wk"].T + params["bk"]
    V = value @ params["wv"].T + params["bv"]
    Qh = Q.reshape(B, Sq, n_heads, head_dim).transpose(0, 2, 1, 3)
    Kh = K.reshape(B, Sk, n_heads, head_dim).transpose(0, 2, 1, 3)
    Vh = V.reshape(B, Sk, n_heads, head_dim).transpose(0, 2, 1, 3)
    energy = jnp.einsum("bhqd,bhkd->bhqk", Qh, Kh) / scale
    if mask is not None:
        energy = jnp.where(mask == 0, -1e10, energy)
    attn = jax.nn.softmax(energy, axis=-1)
    xh = jnp.einsum("bhqk,bhkd->bhqd", attn, Vh)
    x = xh.transpose(0, 2, 1, 3).reshape(B, Sq, hid_dim)
    x = x @ params["wo"].T + params["bo"]
    return x, attn


def init_params(key, hid_dim, n_heads):
    ks = jax.random.split(key, 8)
    bound = 1.0 / math.sqrt(hid_dim)
    u = lambda k, shape: jax.random.uniform(k, shape, jnp.float32, -bound, bound)
    return {
        "n_heads": n_heads,
        "wq": u(ks[0], (hid_dim, hid_dim)), "bq": u(ks[1], (hid_dim,)),
        "wk": u(ks[2], (hid_dim, hid_dim)), "bk": u(ks[3], (hid_dim,)),
        "wv": u(ks[4], (hid_dim, hid_dim)), "bv": u(ks[5], (hid_dim,)),
        "wo": u(ks[6], (hid_dim, hid_dim)), "bo": u(ks[7], (hid_dim,)),
    }


if __name__ == "__main__":
    B, S, hid_dim, n_heads = 2, 8, 32, 4
    root = jax.random.PRNGKey(0)
    kp, kq, kk, kv = jax.random.split(root, 4)

    params = init_params(kp, hid_dim, n_heads)
    prep = prepare_params(params)
    query = jax.random.normal(kq, (B, S, hid_dim), jnp.float32)
    key = jax.random.normal(kk, (B, S, hid_dim), jnp.float32)
    value = jax.random.normal(kv, (B, S, hid_dim), jnp.float32)

    # causal mask, broadcast over heads (shape (B, 1, S, S)), mask==0 -> masked out
    mask = jnp.tril(jnp.ones((S, S), jnp.float32))[None, None, :, :]
    mask = jnp.broadcast_to(mask, (B, 1, S, S))

    # Tolerances are loose because the kernels run their matmuls in bf16
    # (f32 accumulation) and return bf16 attention; the reference is pure f32.
    TOL = dict(atol=5e-2, rtol=5e-2)

    # --- cross-attention-style call (separate Q/K/V projections, with mask) ---
    x, attention = multi_head_attention_forward(prep, query, key, value, mask)
    jax.block_until_ready((x, attention))
    x_ref, attn_ref = _reference(params, query, key, value, mask)
    assert x.shape == (B, S, hid_dim)
    assert attention.shape == (B, n_heads, S, S)
    row_sums = jnp.sum(attention.astype(jnp.float32), axis=-1)
    assert jnp.allclose(row_sums, 1.0, atol=1e-2), "softmax rows"
    assert jnp.allclose(x, x_ref, **TOL), "output mismatch"
    assert jnp.allclose(attention.astype(jnp.float32), attn_ref, **TOL), "attention mismatch"

    # --- self-attention call (fused QKV projection path) ---
    x2, attn2 = multi_head_attention_forward(prep, query, query, query, mask)
    jax.block_until_ready((x2, attn2))
    x2_ref, attn2_ref = _reference(params, query, query, query, mask)
    assert jnp.allclose(x2, x2_ref, **TOL), "self-attn output mismatch"
    assert jnp.allclose(attn2.astype(jnp.float32), attn2_ref, **TOL), "self-attn attention mismatch"

    # --- no-mask path (mask input skipped entirely) ---
    x3, attn3 = multi_head_attention_forward(prep, query, key, value, None)
    jax.block_until_ready((x3, attn3))
    x3_ref, attn3_ref = _reference(params, query, key, value, None)
    assert jnp.allclose(x3, x3_ref, **TOL), "no-mask output mismatch"
    assert jnp.allclose(attn3.astype(jnp.float32), attn3_ref, **TOL), "no-mask attention mismatch"

    print("KERNEL_OK")
</pallas_src>

<mosaic_0001>
module attributes {stable_mosaic.version = 11 : i64} {
  func.func @_linear_kernel(%arg0: i32, %arg1: i32, %arg2: i32, %arg3: memref<16x32xbf16, #tpu.memory_space<vmem>>, %arg4: memref<32x32xbf16, #tpu.memory_space<vmem>>, %arg5: memref<1x32xf32, #tpu.memory_space<vmem>>, %arg6: memref<16x32xbf16, #tpu.memory_space<vmem>>, %arg7: memref<16x32xf32, #tpu.memory_space<vmem>>) attributes {dimension_semantics = [#tpu.dimension_semantics<parallel>, #tpu.dimension_semantics<parallel>, #tpu.dimension_semantics<arbitrary>], iteration_bounds = array<i64: 1, 1, 1>, scalar_prefetch = 0 : i64, scratch_operands = 1 : i64, tpu.core_type = #tpu.core_type<tc>, window_params = [{transform_indices = @transform_0, window_bounds = array<i64: 16, 32>}, {transform_indices = @transform_1, window_bounds = array<i64: 32, 32>}, {transform_indices = @transform_2, window_bounds = array<i64: 1, 32>}, {transform_indices = @transform_3, window_bounds = array<i64: 16, 32>}]} {
    %c0_i32 = arith.constant 0 : i32
    %0 = arith.cmpi eq, %arg2, %c0_i32 : i32
    %1 = arith.extui %0 : i1 to i32
    %c0_i32_0 = arith.constant 0 : i32
    %2 = arith.cmpi ne, %1, %c0_i32_0 : i32
    scf.if %2 {
      %cst_10 = arith.constant 0.000000e+00 : f32
      %12 = vector.broadcast %cst_10 : f32 to vector<16x32xf32>
      %c0_11 = arith.constant 0 : index
      %c0_12 = arith.constant 0 : index
      %13 = vector.load %arg7[%c0_11, %c0_12] : memref<16x32xf32, #tpu.memory_space<vmem>>, vector<16x32xf32>
      tpu.vector_store %arg7[%c0_11, %c0_12], %12 {strides = array<i32>} : memref<16x32xf32, #tpu.memory_space<vmem>>, vector<16x32xf32>,
    } else {
    }
    %c0 = arith.constant 0 : index
    %c0_1 = arith.constant 0 : index
    %3 = vector.load %arg7[%c0, %c0_1] : memref<16x32xf32, #tpu.memory_space<vmem>>, vector<16x32xf32>
    %c0_2 = arith.constant 0 : index
    %c0_3 = arith.constant 0 : index
    %4 = vector.load %arg3[%c0_2, %c0_3] : memref<16x32xbf16, #tpu.memory_space<vmem>>, vector<16x32xbf16>
    %c0_4 = arith.constant 0 : index
    %c0_5 = arith.constant 0 : index
    %5 = vector.load %arg4[%c0_4, %c0_5] : memref<32x32xbf16, #tpu.memory_space<vmem>>, vector<32x32xbf16>
    %cst = arith.constant dense<0.000000e+00> : vector<16x32xf32>
    %6 = tpu.matmul %4, %5, %cst {dimension_numbers = #tpu.dot_dimension_numbers<[1], [1], [0], [0], [0, 0, 1, 0], [], []>} : vector<16x32xbf16>, vector<32x32xbf16>, vector<16x32xf32> -> vector<16x32xf32>
    %7 = arith.addf %3, %6 : vector<16x32xf32>
    %c0_6 = arith.constant 0 : index
    %c0_7 = arith.constant 0 : index
    %8 = vector.load %arg7[%c0_6, %c0_7] : memref<16x32xf32, #tpu.memory_space<vmem>>, vector<16x32xf32>
    tpu.vector_store %arg7[%c0_6, %c0_7], %7 {strides = array<i32>} : memref<16x32xf32, #tpu.memory_space<vmem>>, vector<16x32xf32>,
    %c0_i32_8 = arith.constant 0 : i32
    %9 = arith.cmpi eq, %arg2, %c0_i32_8 : i32
    %10 = arith.extui %9 : i1 to i32
    %c0_i32_9 = arith.constant 0 : i32
    %11 = arith.cmpi ne, %10, %c0_i32_9 : i32
    scf.if %11 {
      %c0_10 = arith.constant 0 : index
      %c0_11 = arith.constant 0 : index
      %12 = vector.load %arg7[%c0_10, %c0_11] : memref<16x32xf32, #tpu.memory_space<vmem>>, vector<16x32xf32>
      %c0_12 = arith.constant 0 : index
      %c0_13 = arith.constant 0 : index
      %13 = vector.load %arg5[%c0_12, %c0_13] : memref<1x32xf32, #tpu.memory_space<vmem>>, vector<1x32xf32>
      %14 = vector.broadcast %13 : vector<1x32xf32> to vector<16x32xf32>
      %15 = arith.addf %12, %14 : vector<16x32xf32>
      %16 = arith.truncf %15 : vector<16x32xf32> to vector<16x32xbf16>
      %c0_14 = arith.constant 0 : index
      %c0_15 = arith.constant 0 : index
      %17 = vector.load %arg6[%c0_14, %c0_15] : memref<16x32xbf16, #tpu.memory_space<vmem>>, vector<16x32xbf16>
      tpu.vector_store %arg6[%c0_14, %c0_15], %16 {strides = array<i32>} : memref<16x32xbf16, #tpu.memory_space<vmem>>, vector<16x32xbf16>,
    } else {
    }
    return
  }
  func.func @transform_0(%arg0: i32, %arg1: i32, %arg2: i32) -> (i32, i32) {
    %c0_i32 = arith.constant 0 : i32
    return %arg0, %arg2 : i32, i32
  }
  func.func @transform_1(%arg0: i32, %arg1: i32, %arg2: i32) -> (i32, i32) {
    %c0_i32 = arith.constant 0 : i32
    return %arg1, %arg2 : i32, i32
  }
  func.func @transform_2(%arg0: i32, %arg1: i32, %arg2: i32) -> (i32, i32) {
    %c0_i32 = arith.constant 0 : i32
    %c0_i32_0 = arith.constant 0 : i32
    return %c0_i32, %arg1 : i32, i32
  }
  func.func @transform_3(%arg0: i32, %arg1: i32, %arg2: i32) -> (i32, i32) {
    %c0_i32 = arith.constant 0 : i32
    return %arg0, %arg1 : i32, i32
  }
}

</mosaic_0001>

<bundles_post_ra>
// kernel: tpu_custom_call.1
= control target key start
LH: loop header
LB: loop body
LE: loop exit
PB: predicated region body
PF: predicated region fallthrough
CT: control target
= control target key end

     0   :  { %8 = vsyncpa [#allocation4], 0  ;;  %s297_s0 = inlined_call_operand.hbm [shape: bf16[16,32], index: 0, kind: input, shape index: {}]   ;;  %s298_s1 = inlined_call_operand.hbm [shape: bf16[32,32], index: 1, kind: input, shape index: {}]   ;;  %s299_s2 = inlined_call_operand.vmem [shape: f32[1,32], index: 2, kind: input, shape index: {}]   ;;  %s300_s3 = inlined_call_operand.hbm [shape: bf16[16,32], index: 3, kind: output, shape index: {}]  }
   0x1   :  { %9 = vsyncpa [#allocation7], 0 }
   0x2   :  { %10 = vsyncpa [#allocation5], 0  ;;  %s15_s14 = sshll.u32 %s297_s0, 4  ;;  %s243_s15 = smov [#allocation3]   ;;  %s16_s14 = int_to_ptr.hbm [resolvable:$true] %s15_s14 }
   0x3   :  { %s17_s16 = sshll.u32 %s243_s15, 4  ;;  %s28_s19 = sshll.u32 %s298_s1, 4  ;;  %s18_s16 = int_to_ptr.vmem [resolvable:$true] %s17_s16  ;;  %s29_s19 = int_to_ptr.hbm [resolvable:$true] %s28_s19 }
   0x4   :  { %s244_s20 = smov 64   ;;  %s245_s21 = smov 4  }
   0x5   :  { %23 = dma.hbm_to_vmem [thread:$0]  %s16_s14, 128, %s18_s16, [#allocation4], %s244_s20, %s244_s20, %s245_s21  }
   0x6   :  { %s246_s22 = smov [#allocation6]  }
   0x7   :  { %s30_s23 = sshll.u32 %s246_s22, 4  ;;  %s31_s23 = int_to_ptr.vmem [resolvable:$true] %s30_s23 }
   0x8   :  { %36 = dma.hbm_to_vmem [thread:$0]  %s29_s19, 256, %s31_s23, [#allocation7], %s244_s20, %s244_s20, %s245_s21  }
   0x9   :  { %237 = dma.done.wait [#allocation4], 128  }
   0xa   :  { %238 = vsyncadd [#allocation4], 4294967168 }
   0xb   :  { %239 = dma.done.wait [#allocation7], 256  }
   0xc   :  { %240 = vsyncadd [#allocation7], 4294967040  ;;  %vm52_vm0 = vcmask 261120   ;;  %v247_v0 = vmov 0.0   ;;  %v157_v1 = vld [vmem:[#allocation6 + $0x8] sm:$0xff]  ;;  %v156_v3 = vld [vmem:[#allocation6] sm:$0xff] }
   0xd   :  { %53 = vst.msk [vmem:[#allocation2] sm:$0xff] %vm52_vm0, %v247_v0  ;;  %v86_v2 = vsel %vm52_vm0, %v157_v1, 0  ;;  %v83_v4 = vsel %vm52_vm0, %v156_v3, 0  ;;  %v155_v5 = vld [vmem:[#allocation3] sm:$0xff]  ;;  %v164_v10 = vld [vmem:[%s299_s2] ss:$0 sm:$0xff] }
   0xe   :  { %54 = vst.msk [vmem:[#allocation2 + $0x8] sm:$0xff] %vm52_vm0, %v247_v0  ;;  %94 = vmatpush.bf16.xpose.msra.mxu0 %v86_v2  ;;  %vm119_vm1 = vcmask 257024   ;;  %s248_s24 = smov [#allocation8]   ;;  %s128_s28 = sshll.u32 %s300_s3, 4  ;;  %s129_s28 = int_to_ptr.hbm [resolvable:$true] %s128_s28 }
   0xf   :  { %s126_s25 = sshll.u32 %s248_s24, 4  ;;  %s127_s25 = int_to_ptr.vmem [resolvable:$true] %s126_s25 }
  0x14   :  { %v55_v6 = vld [vmem:[#allocation2] sm:$0xff] }
  0x15   :  { %v56_v9 = vld [vmem:[#allocation2 + $0x8] sm:$0xff] }
  0x16   :  { %95 = vmatpush.bf16.xpose.msra.mxu0 %v83_v4 }
  0x1d   :  { %154 = vmatmul.msk.bf16.vlgmr.msra.gmra.mxu0 %vm52_vm0, %v155_v5 }
  0x9a   :  { %v97_v7 = vpop.f32.mrf.mxu0 }
  0x9b   :  { %v102_v8 = vadd.f32 %v97_v7, %v55_v6 }
  0x9d   :  { %104 = vst.msk [vmem:[#allocation2] sm:$0xff] %vm52_vm0, %v102_v8 }
  0xa2   :  { %v99_v11 = vpop.f32.mrf.mxu0 }
  0xa3   :  { %v103_v12 = vadd.f32 %v99_v11, %v56_v9 }
  0xa4   :  { %v109_v13 = vld [vmem:[#allocation2] sm:$0xff] }
  0xa5   :  { %105 = vst.msk [vmem:[#allocation2 + $0x8] sm:$0xff] %vm52_vm0, %v103_v12  ;;  %v115_v14 = vadd.f32 %v164_v10, %v109_v13 }
  0xa7   :  { %v117_v15 = vpack.c.bf16 %v115_v14, %v115_v14 }
  0xa9   :  { %120 = vst.msk [vmem:[#allocation8] sm:$0xf] %vm119_vm1, %v117_v15 }
  0xac   :  { %v110_v16 = vld [vmem:[#allocation2 + $0x8] sm:$0xff] }
  0xad   :  { %v116_v17 = vadd.f32 %v164_v10, %v110_v16 }
  0xaf   :  { %v118_v18 = vpack.c.bf16 %v116_v17, %v116_v17 }
  0xb1   :  { %121 = vst.msk [vmem:[#allocation8 + $0x4] sm:$0xf] %vm119_vm1, %v118_v18 }
  0xb2   :  { %134 = dma.vmem_to_hbm [thread:$0]  %s127_s25, 128, %s129_s28, [#allocation5], %s244_s20, %s244_s20, %s245_s21  }
  0xb3   :  { %241 = dma.done.wait [#allocation5], 128  }
  0xb4   :  { %242 = vsyncadd [#allocation5], 4294967168 }
  0xb5   :  { %139 = vsyncpa [#allocation4], 1 }
  0xb6   :  { %140 = vsyncpa [#allocation7], 1 }
  0xb7   :  { %141 = vsyncpa [#allocation5], 1 }

</bundles_post_ra>
